<compile_context>
chip_gen: v7x
topology: tpu7x:2x2x1
jax: 0.10.0
libtpu: 0.0.40
codegen_flags: <defaults>
</compile_context>

<pallas_src>
import functools

import jax
import jax.numpy as jnp
import numpy as np
from jax.experimental import pallas as pl
from jax.experimental.pallas import tpu as pltpu


# Fixed Laplacian weights registered as a buffer in the PyTorch module
# (kept only for the pure-JAX reference check; the kernel bakes them in).
_LAPLACIAN_2D = np.array(
    [[-1.0, -1.0, -1.0],
     [-1.0,  8.0, -1.0],
     [-1.0, -1.0, -1.0]], dtype=np.float32)


@functools.lru_cache(maxsize=1)
def _vmem_capacity_bytes() -> int:
    """Best-effort per-core VMEM capacity; conservative fallback (v7x)."""
    try:
        info = pltpu.get_tpu_info()
        cap = getattr(info, "vmem_capacity_bytes", None)
        if cap:
            return int(cap)
    except Exception:
        pass
    try:
        kind = jax.devices()[0].device_kind.lower()
        if "v5" in kind or "v6" in kind:
            return 128 << 20
    except Exception:
        pass
    return 64 << 20


@functools.lru_cache(maxsize=1)
def _budgets() -> tuple:
    """(per-block byte budget, vmem_limit_bytes) for this TPU generation."""
    cap = _vmem_capacity_bytes()
    if cap >= (100 << 20):            # v5e / v6e: 128 MiB VMEM
        return 4 << 20, 64 << 20
    return 3 << 20, 48 << 20          # v7x / unknown: 64 MiB VMEM, keep headroom


def _laplacian_kernel(x_ref, top_ref, bot_ref, o_ref):
    # x_ref   : (TB, TH, W)    tile rows (unpadded, lane dim = W)
    # top_ref : (TB, 1, 1, W)  row just above the tile (clamped at image top)
    # bot_ref : (TB, 1, 1, W)  row just below the tile (clamped at image bottom)
    # o_ref   : (TB, TH, W)
    tb, th, w = x_ref.shape

    x = x_ref[...]                                    # native dtype
    top = top_ref[...][:, 0]                          # (TB, 1, W)
    bot = bot_ref[...][:, 0]                          # (TB, 1, W)

    col = jax.lax.broadcasted_iota(jnp.int32, (1, 1, w), 2)

    def hsum3(a):
        # Horizontal (lane) 3-sum with replicate padding at true L/R edges.
        left = pltpu.roll(a, shift=1, axis=2)          # left[..., j] = a[..., j-1]
        left = jnp.where(col == 0, a, left)
        right = pltpu.roll(a, shift=w - 1, axis=2)     # right[..., j] = a[..., j+1]
        right = jnp.where(col == w - 1, a, right)
        return (left.astype(jnp.float32) + a.astype(jnp.float32)
                + right.astype(jnp.float32))

    hs = hsum3(x)                                     # (TB, TH, W) f32
    hs_top = hsum3(top)                               # (TB, 1, W)  f32
    hs_bot = hsum3(bot)                               # (TB, 1, W)  f32

    # Vertical (sublane) 3-sum via rolls; halo row-sums substituted at the
    # tile's first / last row (already clamped -> replicate at image edges).
    row = jax.lax.broadcasted_iota(jnp.int32, (1, th, 1), 1)
    up = pltpu.roll(hs, shift=1, axis=1)               # up[:, i] = hs[:, i-1]
    up = jnp.where(row == 0, hs_top, up)
    down = pltpu.roll(hs, shift=th - 1, axis=1)        # down[:, i] = hs[:, i+1]
    down = jnp.where(row == th - 1, hs_bot, down)

    box = up + hs + down                              # 3x3 box sum

    # Laplacian: 8*x - (8 neighbours) == 9*x - box3x3(x)  (f32 accumulation).
    o_ref[...] = (9.0 * x.astype(jnp.float32) - box).astype(o_ref.dtype)


def _choose_tile_h(h: int, w: int, itemsize: int, budget: int,
                   want_split: bool) -> int:
    """Pick a multiple-of-8 row-tile dividing h (h is a multiple of 8)."""
    budget_rows = max(8, budget // max(1, w * itemsize))
    cap = min(h, budget_rows)
    if want_split and h >= 16:
        # Force >= 2 row tiles so both v7x TensorCores get work at B == 1.
        cap = min(cap, max(8, (h // 2 // 8) * 8))
    th = max(8, (cap // 8) * 8)
    while th > 8 and h % th != 0:
        th -= 8
    return th if h % th == 0 else h


def _choose_tile_b(b: int, h: int, th: int, w: int, itemsize: int,
                   budget: int) -> int:
    """Fold whole images into one block only when the plane fits the budget."""
    if th != h:
        return 1
    plane_bytes = max(1, h * w * itemsize)
    tb = max(1, min(b, budget // plane_bytes))
    if b >= 2:
        tb = max(1, min(tb, b // 2))   # keep >= 2 grid steps (v7x megacore)
    while b % tb != 0:
        tb -= 1
    return tb


@jax.jit
def laplacian_filter(x: jax.Array) -> jax.Array:
    """x: (B, 1, H, W) -> (B, 1, H, W), replicate-padded 3x3 Laplacian."""
    assert x.ndim == 4, x.ndim
    b, c, h, w = x.shape
    assert c == 1, c

    block_budget, vmem_limit = _budgets()

    x2 = x[:, 0, :, :]                                  # (B, H, W), lane dim = W

    # Ragged H: edge-pad rows up to a multiple of 8.  The padded rows are
    # copies of the last row, so the bottom-edge replicate semantics are
    # preserved; the extra output rows are dropped below.
    hp = ((h + 7) // 8) * 8
    if hp != h:
        x2 = jnp.pad(x2, ((0, 0), (0, hp - h), (0, 0)), mode="edge")

    itemsize = max(4, jnp.dtype(x.dtype).itemsize)
    th = _choose_tile_h(hp, w, itemsize, block_budget, want_split=(b == 1))
    tb = _choose_tile_b(b, hp, th, w, itemsize, block_budget)
    nh = hp // th
    nb = b // tb

    # Halo rows per H tile (row just above / below, clamped at image edges),
    # built from static slices — only 2*nH rows per image, no gather.
    top = jnp.concatenate([x2[:, 0:1, :], x2[:, th - 1:hp - 1:th, :]], axis=1)
    bot = jnp.concatenate([x2[:, th:hp:th, :], x2[:, hp - 1:hp, :]], axis=1)
    top = top[:, :, None, :]                            # (B, nH, 1, W)
    bot = bot[:, :, None, :]                            # (B, nH, 1, W)

    out = pl.pallas_call(
        _laplacian_kernel,
        out_shape=jax.ShapeDtypeStruct((b, hp, w), x.dtype),
        grid=(nb, nh),
        in_specs=[
            pl.BlockSpec((tb, th, w), lambda i, j: (i, j, 0)),
            pl.BlockSpec((tb, 1, 1, w), lambda i, j: (i, j, 0, 0)),
            pl.BlockSpec((tb, 1, 1, w), lambda i, j: (i, j, 0, 0)),
        ],
        out_specs=pl.BlockSpec((tb, th, w), lambda i, j: (i, j, 0)),
        compiler_params=pltpu.CompilerParams(
            dimension_semantics=("parallel", "parallel"),
            vmem_limit_bytes=vmem_limit,
        ),
    )(x2, top, bot)

    if hp != h:
        out = out[:, :h, :]
    return out[:, None, :, :]                           # (B, 1, H, W)


def _reference(x: jax.Array) -> jax.Array:
    """Pure-JAX reference (replicate pad + lax.conv) for correctness check."""
    w2d = jnp.asarray(_LAPLACIAN_2D)[None, None]        # (1, 1, 3, 3)
    x_pad = jnp.pad(x, ((0, 0), (0, 0), (1, 1), (1, 1)), mode="edge")
    return jax.lax.conv_general_dilated(
        x_pad, w2d, window_strides=(1, 1), padding="VALID",
        dimension_numbers=("NCHW", "OIHW", "NCHW"))


if __name__ == "__main__":
    key = jax.random.PRNGKey(0)

    # Main check: small image, batch 2 (single-channel as the module requires).
    x = jax.random.normal(key, (2, 1, 16, 16), dtype=jnp.float32)
    out = jax.block_until_ready(laplacian_filter(x))
    ref = jax.block_until_ready(_reference(x))
    assert out.shape == (2, 1, 16, 16), out.shape
    assert jnp.allclose(out, ref, atol=1e-5, rtol=1e-5), \
        float(jnp.max(jnp.abs(out - ref)))

    # Second check: ragged H (exercises the edge-pad path, nH > 1 halos and
    # the B == 1 row-split for v7x megacore).
    x2 = jax.random.normal(jax.random.PRNGKey(1), (1, 1, 13, 20),
                           dtype=jnp.float32)
    out2 = jax.block_until_ready(laplacian_filter(x2))
    ref2 = jax.block_until_ready(_reference(x2))
    assert out2.shape == (1, 1, 13, 20), out2.shape
    assert jnp.allclose(out2, ref2, atol=1e-5, rtol=1e-5), \
        float(jnp.max(jnp.abs(out2 - ref2)))

    print("KERNEL_OK")
</pallas_src>

<mosaic_0001>
module attributes {stable_mosaic.version = 11 : i64} {
  func.func @_laplacian_kernel(%arg0: i32, %arg1: i32, %arg2: memref<1x16x16xf32, #tpu.memory_space<vmem>>, %arg3: memref<1x1x1x16xf32, #tpu.memory_space<vmem>>, %arg4: memref<1x1x1x16xf32, #tpu.memory_space<vmem>>, %arg5: memref<1x16x16xf32, #tpu.memory_space<vmem>>) attributes {dimension_semantics = [#tpu.dimension_semantics<parallel>, #tpu.dimension_semantics<parallel>], iteration_bounds = array<i64: 2, 1>, scalar_prefetch = 0 : i64, scratch_operands = 0 : i64, tpu.core_type = #tpu.core_type<tc>, window_params = [{transform_indices = @transform_0, window_bounds = array<i64: 1, 16, 16>}, {transform_indices = @transform_1, window_bounds = array<i64: 1, 1, 1, 16>}, {transform_indices = @transform_2, window_bounds = array<i64: 1, 1, 1, 16>}, {transform_indices = @transform_3, window_bounds = array<i64: 1, 16, 16>}]} {
    %c0 = arith.constant 0 : index
    %c0_0 = arith.constant 0 : index
    %c0_1 = arith.constant 0 : index
    %0 = vector.load %arg2[%c0, %c0_0, %c0_1] : memref<1x16x16xf32, #tpu.memory_space<vmem>>, vector<1x16x16xf32>
    %c0_2 = arith.constant 0 : index
    %c0_3 = arith.constant 0 : index
    %c0_4 = arith.constant 0 : index
    %c0_5 = arith.constant 0 : index
    %1 = vector.load %arg3[%c0_2, %c0_3, %c0_4, %c0_5] : memref<1x1x1x16xf32, #tpu.memory_space<vmem>>, vector<1x1x1x16xf32>
    %2 = vector.shape_cast %1 : vector<1x1x1x16xf32> to vector<1x1x16xf32>
    %c0_6 = arith.constant 0 : index
    %c0_7 = arith.constant 0 : index
    %c0_8 = arith.constant 0 : index
    %c0_9 = arith.constant 0 : index
    %3 = vector.load %arg4[%c0_6, %c0_7, %c0_8, %c0_9] : memref<1x1x1x16xf32, #tpu.memory_space<vmem>>, vector<1x1x1x16xf32>
    %4 = vector.shape_cast %3 : vector<1x1x1x16xf32> to vector<1x1x16xf32>
    %5 = tpu.iota {dimensions = array<i32: 2>} : vector<1x1x16xi32>
    %c1_i32 = arith.constant 1 : i32
    %6 = tpu.dynamic_rotate %0 by %c1_i32 dim 2 : vector<1x16x16xf32>, i32 -> vector<1x16x16xf32>
    %c0_i32 = arith.constant 0 : i32
    %7 = vector.broadcast %c0_i32 : i32 to vector<1x1x16xi32>
    %8 = arith.cmpi eq, %5, %7 : vector<1x1x16xi32>
    %9 = vector.shape_cast %8 : vector<1x1x16xi1> to vector<1x1x16xi1>
    %10 = vector.broadcast %9 : vector<1x1x16xi1> to vector<1x16x16xi1>
    %11 = arith.select %10, %0, %6 : vector<1x16x16xi1>, vector<1x16x16xf32>
    %c15_i32 = arith.constant 15 : i32
    %12 = tpu.dynamic_rotate %0 by %c15_i32 dim 2 : vector<1x16x16xf32>, i32 -> vector<1x16x16xf32>
    %c15_i32_10 = arith.constant 15 : i32
    %13 = vector.broadcast %c15_i32_10 : i32 to vector<1x1x16xi32>
    %14 = arith.cmpi eq, %5, %13 : vector<1x1x16xi32>
    %15 = vector.shape_cast %14 : vector<1x1x16xi1> to vector<1x1x16xi1>
    %16 = vector.broadcast %15 : vector<1x1x16xi1> to vector<1x16x16xi1>
    %17 = arith.select %16, %0, %12 : vector<1x16x16xi1>, vector<1x16x16xf32>
    %18 = arith.addf %11, %0 : vector<1x16x16xf32>
    %19 = arith.addf %18, %17 : vector<1x16x16xf32>
    %c1_i32_11 = arith.constant 1 : i32
    %20 = tpu.dynamic_rotate %2 by %c1_i32_11 dim 2 : vector<1x1x16xf32>, i32 -> vector<1x1x16xf32>
    %c0_i32_12 = arith.constant 0 : i32
    %21 = vector.broadcast %c0_i32_12 : i32 to vector<1x1x16xi32>
    %22 = arith.cmpi eq, %5, %21 : vector<1x1x16xi32>
    %23 = arith.select %22, %2, %20 : vector<1x1x16xi1>, vector<1x1x16xf32>
    %c15_i32_13 = arith.constant 15 : i32
    %24 = tpu.dynamic_rotate %2 by %c15_i32_13 dim 2 : vector<1x1x16xf32>, i32 -> vector<1x1x16xf32>
    %c15_i32_14 = arith.constant 15 : i32
    %25 = vector.broadcast %c15_i32_14 : i32 to vector<1x1x16xi32>
    %26 = arith.cmpi eq, %5, %25 : vector<1x1x16xi32>
    %27 = arith.select %26, %2, %24 : vector<1x1x16xi1>, vector<1x1x16xf32>
    %28 = arith.addf %23, %2 : vector<1x1x16xf32>
    %29 = arith.addf %28, %27 : vector<1x1x16xf32>
    %c1_i32_15 = arith.constant 1 : i32
    %30 = tpu.dynamic_rotate %4 by %c1_i32_15 dim 2 : vector<1x1x16xf32>, i32 -> vector<1x1x16xf32>
    %c0_i32_16 = arith.constant 0 : i32
    %31 = vector.broadcast %c0_i32_16 : i32 to vector<1x1x16xi32>
    %32 = arith.cmpi eq, %5, %31 : vector<1x1x16xi32>
    %33 = arith.select %32, %4, %30 : vector<1x1x16xi1>, vector<1x1x16xf32>
    %c15_i32_17 = arith.constant 15 : i32
    %34 = tpu.dynamic_rotate %4 by %c15_i32_17 dim 2 : vector<1x1x16xf32>, i32 -> vector<1x1x16xf32>
    %c15_i32_18 = arith.constant 15 : i32
    %35 = vector.broadcast %c15_i32_18 : i32 to vector<1x1x16xi32>
    %36 = arith.cmpi eq, %5, %35 : vector<1x1x16xi32>
    %37 = arith.select %36, %4, %34 : vector<1x1x16xi1>, vector<1x1x16xf32>
    %38 = arith.addf %33, %4 : vector<1x1x16xf32>
    %39 = arith.addf %38, %37 : vector<1x1x16xf32>
    %40 = tpu.iota {dimensions = array<i32: 1>} : vector<1x16x1xi32>
    %c1_i32_19 = arith.constant 1 : i32
    %41 = tpu.dynamic_rotate %19 by %c1_i32_19 dim 1 : vector<1x16x16xf32>, i32 -> vector<1x16x16xf32>
    %c0_i32_20 = arith.constant 0 : i32
    %42 = vector.broadcast %c0_i32_20 : i32 to vector<1x16x1xi32>
    %43 = arith.cmpi eq, %40, %42 : vector<1x16x1xi32>
    %44 = vector.shape_cast %43 : vector<1x16x1xi1> to vector<1x16x1xi1>
    %45 = vector.broadcast %44 : vector<1x16x1xi1> to vector<1x16x16xi1>
    %46 = vector.shape_cast %29 : vector<1x1x16xf32> to vector<1x1x16xf32>
    %47 = vector.broadcast %46 : vector<1x1x16xf32> to vector<1x16x16xf32>
    %48 = arith.select %45, %47, %41 : vector<1x16x16xi1>, vector<1x16x16xf32>
    %c15_i32_21 = arith.constant 15 : i32
    %49 = tpu.dynamic_rotate %19 by %c15_i32_21 dim 1 : vector<1x16x16xf32>, i32 -> vector<1x16x16xf32>
    %c15_i32_22 = arith.constant 15 : i32
    %50 = vector.broadcast %c15_i32_22 : i32 to vector<1x16x1xi32>
    %51 = arith.cmpi eq, %40, %50 : vector<1x16x1xi32>
    %52 = vector.shape_cast %51 : vector<1x16x1xi1> to vector<1x16x1xi1>
    %53 = vector.broadcast %52 : vector<1x16x1xi1> to vector<1x16x16xi1>
    %54 = vector.shape_cast %39 : vector<1x1x16xf32> to vector<1x1x16xf32>
    %55 = vector.broadcast %54 : vector<1x1x16xf32> to vector<1x16x16xf32>
    %56 = arith.select %53, %55, %49 : vector<1x16x16xi1>, vector<1x16x16xf32>
    %57 = arith.addf %48, %19 : vector<1x16x16xf32>
    %58 = arith.addf %57, %56 : vector<1x16x16xf32>
    %cst = arith.constant 9.000000e+00 : f32
    %59 = vector.broadcast %cst : f32 to vector<1x16x16xf32>
    %60 = arith.mulf %59, %0 : vector<1x16x16xf32>
    %61 = arith.subf %60, %58 : vector<1x16x16xf32>
    %c0_23 = arith.constant 0 : index
    %c0_24 = arith.constant 0 : index
    %c0_25 = arith.constant 0 : index
    %62 = vector.load %arg5[%c0_23, %c0_24, %c0_25] : memref<1x16x16xf32, #tpu.memory_space<vmem>>, vector<1x16x16xf32>
    tpu.vector_store %arg5[%c0_23, %c0_24, %c0_25], %61 {strides = array<i32>} : memref<1x16x16xf32, #tpu.memory_space<vmem>>, vector<1x16x16xf32>,
    return
  }
  func.func @transform_0(%arg0: i32, %arg1: i32) -> (i32, i32, i32) {
    %c0_i32 = arith.constant 0 : i32
    %c0_i32_0 = arith.constant 0 : i32
    return %arg0, %arg1, %c0_i32 : i32, i32, i32
  }
  func.func @transform_1(%arg0: i32, %arg1: i32) -> (i32, i32, i32, i32) {
    %c0_i32 = arith.constant 0 : i32
    %c0_i32_0 = arith.constant 0 : i32
    %c0_i32_1 = arith.constant 0 : i32
    return %arg0, %arg1, %c0_i32, %c0_i32_0 : i32, i32, i32, i32
  }
  func.func @transform_2(%arg0: i32, %arg1: i32) -> (i32, i32, i32, i32) {
    %c0_i32 = arith.constant 0 : i32
    %c0_i32_0 = arith.constant 0 : i32
    %c0_i32_1 = arith.constant 0 : i32
    return %arg0, %arg1, %c0_i32, %c0_i32_0 : i32, i32, i32, i32
  }
  func.func @transform_3(%arg0: i32, %arg1: i32) -> (i32, i32, i32) {
    %c0_i32 = arith.constant 0 : i32
    %c0_i32_0 = arith.constant 0 : i32
    return %arg0, %arg1, %c0_i32 : i32, i32, i32
  }
}

</mosaic_0001>

<bundles_post_ra>
// kernel: laplacian_filter.1
= control target key start
LH: loop header
LB: loop body
LE: loop exit
PB: predicated region body
PF: predicated region fallthrough
CT: control target
= control target key end

     0   :  { %8 = vsyncpa [#allocation3], 0  ;;  %s981_s0 = inlined_call_operand.hbm [shape: f32[2,16,16], index: 0, kind: input, shape index: {}]   ;;  %s982_s1 = inlined_call_operand.vmem [shape: f32[2,1,1,16], index: 1, kind: input, shape index: {}]   ;;  %s983_s2 = inlined_call_operand.vmem [shape: f32[2,1,1,16], index: 2, kind: input, shape index: {}]   ;;  %s984_s3 = inlined_call_operand.hbm [shape: f32[2,16,16], index: 3, kind: output, shape index: {}]  }
   0x1   :  { %10 = vsyncpa [#allocation3 + $0x1], 0 }
   0x2   :  { %11 = vsyncpa [#allocation4], 0 }
   0x3   :  { %13 = vsyncpa [#allocation4 + $0x1], 0  ;;  %s744_s12 = smov 0   ;;  %s746_s13 = smov 0  }
   0x4   :  { %s748_s14 = smov 0   ;;  %s750_s15 = smov 0  }
   0x5   :  { %s752_s16 = smov 0   ;;  %s754_s17 = smov 0  }
   0x6 LB: > { %s515_s18 = sadd.s32 4294967295, %s713_s17   ;;  %s516_s19 = sadd.s32 4294967294, %s713_s17   ;;  %s713_s17 = sphi %s754_s17, %s19_s17   ;;  %s709_s16 = sphi %s752_s16, %s999_s16   ;;  %s705_s15 = sphi %s750_s15, %s998_s15   ;;  %s701_s14 = sphi %s748_s14, %s997_s14   ;;  %s697_s13 = sphi %s746_s13, %s996_s13   ;;  %s693_s12 = sphi %s744_s12, %s995_s12  }
   0x7   : > { %s31_s20 = sadd.s32 1, %s709_s16  ;;  %s40_s21 = sadd.s32 1, %s701_s14 }
   0x8   : > { %p33_p0 = scmp.ge.s32.totalorder %s31_s20, 2  ;;  %p47_p1 = scmp.ne.s32.totalorder %s701_s14, %s697_s13 }
   0x9   : > { %p48_p2 = scmp.eq.s32.totalorder %s713_s17, 0  ;;  %p53_p3 = scmp.ne.s32.totalorder %s697_s13, %s693_s12 }
   0xa   : > { %s1001_s20 = smov (%p33_p0, %s31_s20), 0  ;;  %p54_p5 = scmp.eq.s32.totalorder %s515_s18, 0 }
   0xb   : > { %p785_p4 = por %p48_p2, %p47_p1  ;;  %s35_s23 = ssub.s32 %s709_s16, %s1001_s20 }
   0xc   : > { %p135_p6 = scmp.eq.s32.totalorder %s515_s18, 1  ;;  %p38_p7 = scmp.eq.s32.totalorder %s35_s23, 0 }
   0xd   : > { %p791_p8 = por %p54_p5, %p53_p3  ;;  %p141_p10 = scmp.eq.s32.totalorder %s516_s19, 1 }
   0xe   : > { %p795_p9 = por %p135_p6, %p47_p1  ;;  %p544_p13 = scmp.lt.s32.totalorder %s713_s17, 2 }
   0xf   : > { %s800_s26 = scalar_select %p38_p7, %s701_s14, %s40_s21  }
  0x10   : > { %s988_s25 = scalar_select %p795_p9, 1, 0 }
  0x11   : > { %p802_p11 = por %p141_p10, %p53_p3  ;;  %s161_s28 = sand.u32 1, %s701_s14  }
  0x12   : > { %s519_s29 = sshll.u32 %s161_s28, 4  ;;  %s530_s30 = sshll.u32 %s709_s16, 8 }
  0x13   : > { %s989_s27 = scalar_select %p802_p11, 1, 0 }
  0x14   : > { %s813_s6 = scalar_lea.hbm %s981_s0, %s530_s30  ;;  %s165_s7 = scalar_lea.vmem [#allocation2], %s519_s29 }
  0x15   : > { %s174_s8 = sshll.u32 %s165_s7, 4  ;;  %p819_p0 = pnand %p544_p13, %p785_p4  ;;  %s815_s8 = int_to_ptr.vmem [resolvable:$true] %s174_s8 }
  0x16   : > { %s824_s10 = scalar_lea.sflag [#allocation3], %s161_s28  ;;  %s601_s11 = scalar_lea.hbm %s813_s6, 256 }
  0x17   : > { %p602_p2 = scmp.ne.s32.totalorder %s813_s6, %s601_s11  ;;  %p603_p3 = pneg %p819_p0 }
  0x18   : > { %s606_s21 = scalar_lea.hbm %s981_s0, 512  ;;  %p607_p4 = scmp.lt.u32.totalorder %s813_s6, %s981_s0 }
  0x19   : > { %p604_p5 = pnand %p603_p3, %p602_p2  ;;  %p608_p7 = scmp.lt.u32.totalorder %s606_s21, %s601_s11 }
  0x1a   : > { %p610_p13 = scmp.lt.u32.totalorder %s601_s11, %s813_s6 }
  0x1b   : > { %p605_p6 = pneg %p604_p5  ;;  %p609_p10 = por %p608_p7, %p607_p4 }
  0x1d   : > { %p611_p12 = por %p610_p13, %p609_p10 }
  0x1f   : > { %p612_p1 = pnand %p611_p12, %p605_p6 }
  0x21   : > { %615 = shalt.err (!%p612_p1)
}
  0x22   : > { %s616_s28 = scalar_lea.vmem %s815_s8, 256  ;;  %s715_s29 = smov [#allocation2]  }
  0x23   : > { %p617_p2 = scmp.ne.s32.totalorder %s815_s8, %s616_s28  ;;  %s621_s30 = sshll.u32 %s715_s29, 4  ;;  %s622_s30 = int_to_ptr.vmem [resolvable:$false] %s621_s30 }
  0x24   : > { %s623_s4 = scalar_lea.vmem %s622_s30, 512  ;;  %p624_p9 = scmp.lt.s32.totalorder %s815_s8, %s622_s30 }
  0x25   : > { %p619_p5 = pnand %p617_p2, %p603_p3  ;;  %p625_p4 = scmp.lt.s32.totalorder %s623_s4, %s616_s28 }
  0x27   : > { %p620_p11 = pneg %p619_p5  ;;  %p626_p7 = por %p625_p4, %p624_p9 }
  0x29   : > { %p627_p10 = pnand %p626_p7, %p620_p11 }
  0x2b   : > { %630 = shalt.err (!%p627_p10)
}
  0x2c   : > { %s716_s5 = smov 128   ;;  %s717_s7 = smov 8  }
  0x2d   : > { %539 = dma.hbm_to_vmem [thread:$0]  (!%p819_p0), %s813_s6, 256, %s815_s8, %s824_s10, %s716_s5, %s716_s5, %s717_s7  }
  0x2e   : > { %p200_p12 = scmp.lt.s32.totalorder %s713_s17, 3  ;;  %p991_p1 = scmp.ge.s32.totalorder %s713_s17, 1 }
  0x30   : > { %p201_p3 = pnand %p991_p1, %p200_p12 }
  0x31   : > { %s856_s11 = sand.u32 (!%p201_p3), 1, %s697_s13  }
  0x32   : > { %204 = sbr.rel (%p201_p3) target bundleno = 447 (0x1bf), region = 32  ;;  %s523_s18 = sshll.u32 (!%p201_p3), %s856_s11, 4 }
  0x33   : > { %s207_s19 = scalar_lea.sflag (!%p201_p3), [#allocation3], %s856_s11  ;;  %s210_s21 = scalar_lea.vmem (!%p201_p3), [#allocation2], %s523_s18 }
  0x39   : > { %684 = dma.done.wait (%p791_p8), %s207_s19, 256  }
  0x3a   : > { %686 = vsyncadd (%p791_p8), %s207_s19, 4294967040  ;;  %p246_p9 = scmp.lt.s32.totalorder %s705_s15, 1  ;;  %v874_v0 = vld [vmem:[%s210_s21] sm:$0xff]  ;;  %s718_s29 = smov 16   ;;  %v880_v2 = vld [vmem:[%s210_s21 + $0x8] sm:$0xff]  ;;  %vm265_vm0 = vcmask 1047680   ;;  %v263_v20 = vlaneseq }
  0x3b   : > { %266 = vrot.lane.b32.xlu0 %v874_v0, %s718_s29  ;;  %s719_s24 = smov 113   ;;  %s720_s30 = smov 127   ;;  %v381_v58 = vmul.f32 9.0, %v874_v0  ;;  %v382_v63 = vmul.f32 9.0, %v880_v2  ;;  %vm385_vm7 = vcmask 130048  }
  0x3c   : > { %s247_s6 = scalar_select %p246_p9, %s705_s15, 1  ;;  %v264_v21 = vand.u32 127, %v263_v20  ;;  %v341_v27 = vshrl.u32 %v263_v20, 7 }
  0x3d   : > { %s531_s4 = sshll.u32 %s705_s15, 8  ;;  %s244_s5 = scalar_lea.vmem [#allocation5], %s523_s18 }
  0x3e   : > { %s251_s10 = scalar_lea.vmem %s982_s1, %s247_s6  ;;  %s257_s28 = scalar_lea.vmem %s983_s2, %s247_s6  ;;  %vm278_vm1 = vcmp.eq.s32.totalorder %v264_v21, 0  ;;  %vm291_vm2 = vcmp.eq.s32.totalorder %v264_v21, 15  ;;  %v356_v38 = vsub.s32 0, %v341_v27  ;;  %vm345_vm3 = vcmp.lt.s32.totalorder %v341_v27, 1 }
  0x3f   : > { %v876_v1 = vld [vmem:[%s251_s10] sm:$0x1]  ;;  %269 = vrot.lane.b32.xlu0 %v880_v2, %s718_s29  ;;  %vm348_vm4 = vcmp.eq.s32.totalorder %v341_v27, 0  ;;  %v342_v47 = vadd.s32 8, %v341_v27  ;;  %vm362_vm5 = vcmp.lt.s32.totalorder %v341_v27, 7  ;;  %s404_s7 = sshll.u32 %s244_s5, 4  ;;  %s930_s6 = scalar_lea.hbm %s984_s3, %s531_s4  ;;  %s932_s7 = int_to_ptr.vmem [resolvable:$true] %s404_s7 }
  0x40   : > { %306 = vrot.lane.b32.xlu1 %v876_v1, %s718_s29  ;;  %v882_v3 = vld [vmem:[%s257_s28] sm:$0x1]  ;;  %s389_s15 = scalar_lea.sflag [#allocation4], %s856_s11  ;;  %s631_s18 = scalar_lea.vmem %s932_s7, 256 }
  0x41   : > { %vm366_vm6 = vcmp.eq.s32.totalorder %v342_v47, 15  ;;  %p632_p8 = scmp.ne.s32.totalorder %s932_s7, %s631_s18  ;;  %p992_p11 = scmp.ne.s32.totalorder %s988_s25, 0 }
  0x42   : > { %s721_s8 = smov [#allocation5]  }
  0x43   : > { %p633_p0 = pnand %p632_p8, %p992_p11  ;;  %s635_s9 = sshll.u32 %s721_s8, 4  ;;  %s636_s9 = int_to_ptr.vmem [resolvable:$false] %s635_s9 }
  0x44   : > { %323 = vrot.lane.b32.xlu1 %v882_v3, %s718_s29  ;;  %s637_s10 = scalar_lea.vmem %s636_s9, 512  ;;  %p638_p13 = scmp.lt.s32.totalorder %s932_s7, %s636_s9 }
  0x45   : > { %p634_p6 = pneg %p633_p0  ;;  %p639_p2 = scmp.lt.s32.totalorder %s637_s10, %s631_s18 }
  0x47   : > { %p640_p5 = por %p639_p2, %p638_p13 }
  0x49   : > { %p641_p4 = pnand %p640_p5, %p634_p6 }
  0xad   : > { %v267_v4 = vpop.permute.xlu0 %266 }
  0xae   : > { %v268_v6 = vsel %vm265_vm0, %v267_v4, %v874_v0 }
  0xaf   : > { %272 = vrot.lane.b32.xlu0 %v268_v6, %s718_s29 }
  0xb1   : > { %v270_v8 = vpop.permute.xlu0 %269 }
  0xb2   : > { %v307_v5 = vpop.permute.xlu1 %306  ;;  %v271_v10 = vsel %vm265_vm0, %v270_v8, %v880_v2 }
  0xb3   : > { %v308_v7 = vsel %vm265_vm0, %v307_v5, %v876_v1  ;;  %274 = vrot.lane.b32.xlu1 %v271_v10, %s718_s29 }
  0xb4   : > { %309 = vrot.lane.b32.xlu0 %v308_v7, %s718_s29 }
  0xb6   : > { %v324_v9 = vpop.permute.xlu1 %323 }
  0xb7   : > { %v325_v11 = vsel %vm265_vm0, %v324_v9, %v882_v3 }
  0xb8   : > { %326 = vrot.lane.b32.xlu1 %v325_v11, %s718_s29 }
 0x121   : > { %v273_v12 = vpop.permute.xlu0 %272 }
 0x122   : > { %v276_v13 = vsel %vm265_vm0, %v273_v12, %v874_v0 }
 0x123   : > { %283 = vrot.lane.b32.xlu0 %v276_v13, %s719_s24 }
 0x125   : > { %v275_v14 = vpop.permute.xlu1 %274 }
 0x126   : > { %v310_v15 = vpop.permute.xlu0 %309  ;;  %v277_v16 = vsel %vm265_vm0, %v275_v14, %v880_v2 }
 0x127   : > { %v311_v17 = vsel %vm265_vm0, %v310_v15, %v876_v1  ;;  %285 = vrot.lane.b32.xlu1 %v277_v16, %s719_s24 }
 0x128   : > { %313 = vrot.lane.b32.xlu0 %v311_v17, %s719_s24 }
 0x12a   : > { %v327_v18 = vpop.permute.xlu1 %326 }
 0x12b   : > { %294 = vrot.lane.b32.xlu1 %v276_v13, %s720_s30  ;;  %v328_v19 = vsel %vm265_vm0, %v327_v18, %v882_v3 }
 0x12c   : > { %296 = vrot.lane.b32.xlu0 %v277_v16, %s720_s30 }
 0x12f   : > { %317 = vrot.lane.b32.xlu1 %v311_v17, %s720_s30 }
 0x130   : > { %330 = vrot.lane.b32.xlu0 %v328_v19, %s719_s24 }
 0x133   : > { %334 = vrot.lane.b32.xlu1 %v328_v19, %s720_s30 }
 0x195   : > { %v284_v22 = vpop.permute.xlu0 %283 }
 0x196   : > { %v289_v25 = vsel %vm278_vm1, %v874_v0, %v284_v22 }
 0x197   : > { %v302_v28 = vadd.f32 %v289_v25, %v874_v0 }
 0x199   : > { %v286_v23 = vpop.permute.xlu1 %285 }
 0x19a   : > { %v314_v24 = vpop.permute.xlu0 %313  ;;  %v290_v26 = vsel %vm278_vm1, %v880_v2, %v286_v23 }
 0x19b   : > { %v303_v29 = vadd.f32 %v290_v26, %v880_v2  ;;  %v316_v32 = vsel %vm278_vm1, %v876_v1, %v314_v24 }
 0x19c   : > { %v321_v37 = vadd.f32 %v316_v32, %v876_v1 }
 0x19d   : > { %v295_v30 = vpop.permute.xlu1 %294 }
 0x19e   : > { %v297_v31 = vpop.permute.xlu0 %296  ;;  %v300_v33 = vsel %vm291_vm2, %v874_v0, %v295_v30 }
 0x19f   : > { %v301_v34 = vsel %vm291_vm2, %v880_v2, %v297_v31  ;;  %v304_v35 = vadd.f32 %v302_v28, %v300_v33 }
 0x1a0   : > { %v305_v36 = vadd.f32 %v303_v29, %v301_v34 }
 0x1a1   : > { %v318_v39 = vpop.permute.xlu1 %317  ;;  %v343_v41 = vrot.slane %v304_v35, 7  ;;  %v360_v48 = vrot.slane %v304_v35, 1 }
 0x1a2   : > { %v331_v40 = vpop.permute.xlu0 %330  ;;  %v344_v42 = vrot.slane %v305_v36, 7  ;;  %v320_v43 = vsel %vm291_vm2, %v876_v1, %v318_v39  ;;  %v361_v49 = vrot.slane %v305_v36, 1 }
 0x1a3   : > { %v333_v44 = vsel %vm278_vm1, %v882_v3, %v331_v40  ;;  %v322_v45 = vadd.f32 %v321_v37, %v320_v43 }
 0x1a4   : > { %v338_v46 = vadd.f32 %v333_v44, %v882_v3  ;;  %v347_v52 = vsel %vm345_vm3, %v344_v42, %v343_v41  ;;  %v346_v54 = vsel %vm345_vm3, %v343_v41, %v344_v42  ;;  %v363_v59 = vsel %vm362_vm5, %v360_v48, %v361_v49 }
 0x1a5   : > { %v357_v50 = vrot.slane %v322_v45, %v356_v38  ;;  %v335_v51 = vpop.permute.xlu1 %334  ;;  %v378_v61 = vadd.f32 %v346_v54, %v305_v36  ;;  %v364_v1 = vsel %vm362_vm5, %v361_v49, %v360_v48 }
 0x1a6   : > { %v337_v53 = vsel %vm291_vm2, %v882_v3, %v335_v51 }
 0x1a7   : > { %v358_v55 = vsel %vm348_vm4, %v357_v50, %v347_v52  ;;  %v339_v56 = vadd.f32 %v338_v46, %v337_v53 }
 0x1a8   : > { %v377_v57 = vadd.f32 %v358_v55, %v304_v35 }
 0x1a9   : > { %v374_v60 = vrot.slane %v339_v56, %v356_v38 }
 0x1aa   : > { %v379_v62 = vadd.f32 %v377_v57, %v363_v59 }
 0x1ab   : > { %v376_v3 = vsel %vm366_vm6, %v374_v60, %v364_v1 }
 0x1ac   : > { %v383_v4 = vsub.f32 %v381_v58, %v379_v62  ;;  %v380_v5 = vadd.f32 %v378_v61, %v376_v3 }
 0x1ae   : > { %v384_v0 = vsub.f32 %v382_v63, %v380_v5  ;;  %386 = vst.msk [vmem:[%s244_s5] sm:$0xff] %vm385_vm7, %v383_v4 }
 0x1b0   : > { %387 = vst.msk [vmem:[%s244_s5 + $0x8] sm:$0xff] %vm385_vm7, %v384_v0 }
 0x1b1   : > { %644 = shalt.err (!%p641_p4)
}
 0x1b2   : > { %s645_s22 = scalar_lea.hbm %s930_s6, 256  ;;  %s649_s29 = scalar_lea.hbm %s984_s3, 512 }
 0x1b3   : > { %p646_p7 = scmp.ne.s32.totalorder %s930_s6, %s645_s22  ;;  %p650_p1 = scmp.lt.u32.totalorder %s930_s6, %s984_s3 }
 0x1b4   : > { %p651_p3 = scmp.lt.u32.totalorder %s649_s29, %s645_s22  ;;  %p653_p8 = scmp.lt.u32.totalorder %s645_s22, %s930_s6 }
 0x1b5   : > { %p647_p10 = pnand %p646_p7, %p992_p11 }
 0x1b6   : > { %p652_p9 = por %p651_p3, %p650_p1 }
 0x1b7   : > { %p648_p12 = pneg %p647_p10 }
 0x1b8   : > { %p654_p0 = por %p653_p8, %p652_p9 }
 0x1ba   : > { %p655_p6 = pnand %p654_p0, %p648_p12 }
 0x1bc   : > { %658 = shalt.err (!%p655_p6)
}
 0x1bd   : > { %s722_s4 = smov 128   ;;  %s723_s5 = smov 8  }
 0x1be   : > { %534 = dma.vmem_to_hbm [thread:$0]  (%p992_p11), %s932_s7, 256, %s930_s6, %s389_s15, %s722_s4, %s722_s4, %s723_s5  }
 0x1bf PF: > { %s419_s19 = sand.u32 1, %s693_s12   ;;  %p993_p13 = scmp.ne.s32.totalorder %s989_s27, 0 }
 0x1c0   : > { %p994_p2 = scmp.ge.s32.totalorder %s713_s17, 2  ;;  %s420_s21 = scalar_lea.sflag [#allocation4], %s419_s19 }
 0x1c2   : > { %p541_p5 = pnand %p994_p2, %p993_p13 }
 0x1c4   : > { %688 = dma.done.wait (!%p541_p5), %s420_s21, 256  }
 0x1c5   : > { %690 = vsyncadd (!%p541_p5), %s420_s21, 4294967040  ;;  %s19_s17 = sadd.s32 1, %s713_s17   ;;  %s995_s12 = smov %s697_s13 }
 0x1c6   : > { %p16_p4 = scmp.ge.s32.totalorder %s19_s17, 4   ;;  %s996_s13 = smov %s701_s14 }
 0x1c7   : > { %s997_s14 = smov %s800_s26  ;;  %s998_s15 = smov %s709_s16 }
 0x1c8   : > { %s999_s16 = smov %s1001_s20  ;;  %18 = sbr.rel (!%p16_p4) target bundleno = 6 (0x6), region = 83 }
 0x1cf   :  { %425 = vsyncpa [#allocation3], 1 }
 0x1d0   :  { %427 = vsyncpa [#allocation3 + $0x1], 1 }
 0x1d1   :  { %428 = vsyncpa [#allocation4], 1 }
 0x1d2   :  { %430 = vsyncpa [#allocation4 + $0x1], 1 }

</bundles_post_ra>
